<compile_context>
chip_gen: v5e
topology: v5e:2x2
jax: 0.10.0
libtpu: 0.0.40
codegen_flags: <defaults>
</compile_context>

<pallas_src>
import functools

import jax
import jax.numpy as jnp
from jax import lax
from jax.experimental import pallas as pl
from jax.experimental.pallas import tpu as pltpu


# ----------------------------------------------------------------------------
# helpers
# ----------------------------------------------------------------------------
def _tile(dim, target):
    """Largest tile <= target that divides `dim` and is a multiple of 8 (else full dim)."""
    if dim <= target:
        return dim
    for t in range(min(target, dim), 7, -1):
        if dim % t == 0 and t % 8 == 0:
            return t
    return dim  # TODO(synk): pad awkward N/M instead of falling back to one huge block


def _maybe_buffered(block_shape, index_map, depth):
    """BlockSpec with `depth`-deep multi-buffering when the installed JAX supports it."""
    buffered = getattr(pl, "Buffered", None)
    if buffered is not None:
        try:
            return pl.BlockSpec(block_shape, index_map, pipeline_mode=buffered(depth))
        except Exception:  # older JAX without pipeline_mode -> plain double buffering
            pass
    return pl.BlockSpec(block_shape, index_map)


def _use_bf16_exp_default():
    # bf16 EUP exists on v6e/v7x (exp is the binding slot there); v5e has no bf16 VPU/EUP.
    try:
        kind = jax.devices()[0].device_kind.lower()
    except Exception:
        return False
    return ("v6" in kind) or ("v7" in kind)


# ----------------------------------------------------------------------------
# kernel 1: fused linear projections   (B, S, Din) @ (Din, P_i) -> (B, S, P_i) bf16
# ----------------------------------------------------------------------------
def _proj_kernel(x_ref, *refs):
    # x_ref: (1, tm, Din) bf16; refs = n weight refs (Din, P_i) bf16 + n output refs.
    n = len(refs) // 2
    w_refs, o_refs = refs[:n], refs[n:]
    x = x_ref[0]
    for w_ref, o_ref in zip(w_refs, o_refs):
        o_ref[0] = jnp.dot(x, w_ref[...],
                           preferred_element_type=jnp.float32).astype(o_ref.dtype)


def _project(x, weights, *, tm_target=256):
    """x: (B, S, Din) bf16; weights: list of (Din, P_i) bf16 -> list of (B, S, P_i) bf16.

    One fused pallas_call: x is streamed from HBM exactly once, and every matmul /
    HBM store is lane-dense (P_i = heads*dim_head)."""
    B, S, Din = x.shape
    tm = _tile(S, tm_target)
    grid = (B, S // tm)
    in_specs = [pl.BlockSpec((1, tm, Din), lambda b, i: (b, i, 0))]
    in_specs += [pl.BlockSpec(w.shape, lambda b, i: (0, 0)) for w in weights]
    out_specs = [pl.BlockSpec((1, tm, int(w.shape[1])), lambda b, i: (b, i, 0))
                 for w in weights]
    out_shape = [jax.ShapeDtypeStruct((B, S, int(w.shape[1])), jnp.bfloat16)
                 for w in weights]
    return pl.pallas_call(
        _proj_kernel,
        out_shape=out_shape,
        grid_spec=pltpu.PrefetchScalarGridSpec(
            num_scalar_prefetch=0, grid=grid,
            in_specs=in_specs, out_specs=out_specs),
        compiler_params=pltpu.CompilerParams(
            dimension_semantics=("parallel", "parallel")),
    )(x, *weights)


# ----------------------------------------------------------------------------
# kernel 2: flash attention (all heads in-kernel) + fused wide output projection
# ----------------------------------------------------------------------------
def _flash_kernel(q_ref, k_ref, v_ref, wo_ref, bo_ref, o_ref,
                  m_sc, l_sc, acc_sc, ob_sc, *, heads, dim_head, use_bf16_exp):
    ki = pl.program_id(2)
    nk = pl.num_programs(2)
    d = dim_head

    # start of a new (b, qi) kv sweep -> reset per-head online-softmax state
    @pl.when(ki == 0)
    def _():
        m_sc[...] = jnp.full_like(m_sc, -jnp.inf)
        l_sc[...] = jnp.zeros_like(l_sc)
        acc_sc[...] = jnp.zeros_like(acc_sc)

    # Heads are looped in-kernel, so the (tk, inner) K/V tiles (which span all heads)
    # are DMA'd from HBM once per (b, qi, ki) and reused for every head.
    for hh in range(heads):
        sl = slice(hh * d, (hh + 1) * d)
        qh = q_ref[0, :, sl]                       # (tq, d) bf16 (scale folded into Wq)
        kh = k_ref[0, :, sl]                       # (tk, d) bf16
        vh = v_ref[0, :, sl]                       # (tk, d) bf16

        # logits: contract the channel axis of BOTH operands -> no k.T materialization
        s = lax.dot_general(qh, kh, (((1,), (1,)), ((), ())),
                            preferred_element_type=jnp.float32)   # (tq, tk) f32

        m_prev = m_sc[hh]                                          # (tq, 1) f32
        m_new = jnp.maximum(m_prev, jnp.max(s, axis=-1, keepdims=True))
        alpha = jnp.exp(m_prev - m_new)
        if use_bf16_exp:
            # v6e/v7x: EUP throughput is the binding slot -> bf16 exp, feed PV directly.
            p = jnp.exp((s - m_new).astype(jnp.bfloat16))
            l_new = alpha * l_sc[hh] + jnp.sum(p.astype(jnp.float32),
                                               axis=-1, keepdims=True)
        else:
            # v5e: keep all softmax math in f32 (no bf16 VPU/EUP).
            p = jnp.exp(s - m_new)
            l_new = alpha * l_sc[hh] + jnp.sum(p, axis=-1, keepdims=True)
            p = p.astype(vh.dtype)
        acc_sc[hh] = alpha * acc_sc[hh] + jnp.dot(
            p, vh, preferred_element_type=jnp.float32)
        l_sc[hh] = l_new
        m_sc[hh] = m_new

    # last kv tile: normalize every head into a (tq, inner) bf16 buffer, then ONE wide
    # (tq, inner) @ (inner, Dq) matmul against the resident W_out, add bias, and do a
    # single lane-dense (tq, Dq) store.
    @pl.when(ki == nk - 1)
    def _():
        for hh in range(heads):
            inv_l = pl.reciprocal(l_sc[hh])          # exact; it's only a (tq,1) op
            ob_sc[:, hh * d:(hh + 1) * d] = (acc_sc[hh] * inv_l).astype(jnp.bfloat16)
        proj = jnp.dot(ob_sc[...], wo_ref[...], preferred_element_type=jnp.float32)
        o_ref[0] = (proj + bo_ref[...]).astype(o_ref.dtype)


# ----------------------------------------------------------------------------
# wrapper
# ----------------------------------------------------------------------------
def pack_params(params, *, heads, dim_head):
    """One-time weight pre-pack (hoisted out of the per-call hot path).

    PyTorch Linear weights are (out, in); store (in, out) bf16 slabs and fold the
    attention scale dim_head**-0.5 into Wq (exact for power-of-two dim_head)."""
    scale = float(dim_head) ** -0.5
    return {
        "wq": (params["wq"].T * scale).astype(jnp.bfloat16),    # (Dq, inner), pre-scaled
        "wk": params["wk"].T.astype(jnp.bfloat16),              # (Dc, inner)
        "wv": params["wv"].T.astype(jnp.bfloat16),              # (Dc, inner)
        "wo": params["wo"].T.astype(jnp.bfloat16),              # (inner, Dq)
        "bo": params["bo"].reshape(1, -1).astype(jnp.float32),  # (1, Dq)
    }


def cross_attention(x, packed, context=None, mask=None, *, heads, dim_head,
                    tq_target=256, tk_target=128, kv_buffers=3,
                    use_bf16_exp=None, vmem_limit_bytes=None):
    """x: (B, N, query_dim) f32; context: (B, M, context_dim) f32 or None (self-attn).
    `packed` comes from pack_params()."""
    if mask is not None:
        # TODO(synk): key-padding mask (masked_fill(-inf)) not implemented in the kernel.
        raise NotImplementedError("mask is not supported by the Pallas kernel")
    if use_bf16_exp is None:
        use_bf16_exp = _use_bf16_exp_default()

    B, N, Dq = x.shape
    d = dim_head
    inner = heads * d

    # projections: stream x / context from HBM once each (bf16), lane-dense outputs
    x_bf16 = x.astype(jnp.bfloat16)
    if context is None:
        M = N
        q, k, v = _project(x_bf16, [packed["wq"], packed["wk"], packed["wv"]])
    else:
        M = context.shape[1]
        (q,) = _project(x_bf16, [packed["wq"]])
        k, v = _project(context.astype(jnp.bfloat16), [packed["wk"], packed["wv"]])
    wo, bo = packed["wo"], packed["bo"]

    tq = _tile(N, tq_target)
    tk = _tile(M, tk_target)
    # v7x megacore: keep >= 2 "parallel" grid blocks when possible so both TCs get work.
    while B * (N // tq) < 2 and tq > 8 and tq % 2 == 0 and (tq // 2) % 8 == 0:
        tq //= 2
    nq, nk = N // tq, M // tk
    grid = (B, nq, nk)                   # kv reduction innermost; heads handled in-kernel

    cost = pl.CostEstimate(
        flops=int(4 * B * heads * N * M * d + 2 * B * N * inner * Dq),
        transcendentals=int(B * heads * N * M),
        bytes_accessed=int(2 * B * N * inner               # q read once (bf16)
                           + 2 * 2 * B * M * inner * nq    # k+v re-read once per q tile
                           + 2 * inner * Dq + 4 * Dq       # resident W_out + bias
                           + 4 * B * N * Dq),               # output write (f32)
    )

    kernel = functools.partial(_flash_kernel, heads=heads, dim_head=d,
                               use_bf16_exp=use_bf16_exp)

    out = pl.pallas_call(
        kernel,
        out_shape=jax.ShapeDtypeStruct((B, N, Dq), x.dtype),
        grid_spec=pltpu.PrefetchScalarGridSpec(
            num_scalar_prefetch=0,
            grid=grid,
            in_specs=[
                # q tile: block index constant along ki -> stays VMEM-resident
                pl.BlockSpec((1, tq, inner), lambda b, qi, ki: (b, qi, 0)),
                # k / v tiles span ALL heads; optional deeper buffering hides DMA latency
                _maybe_buffered((1, tk, inner), lambda b, qi, ki: (b, ki, 0), kv_buffers),
                _maybe_buffered((1, tk, inner), lambda b, qi, ki: (b, ki, 0), kv_buffers),
                # full W_out / bias: constant index -> fetched once, resident
                pl.BlockSpec((inner, Dq), lambda b, qi, ki: (0, 0)),
                pl.BlockSpec((1, Dq), lambda b, qi, ki: (0, 0)),
            ],
            out_specs=pl.BlockSpec((1, tq, Dq), lambda b, qi, ki: (b, qi, 0)),
            scratch_shapes=[
                pltpu.VMEM((heads, tq, 1), jnp.float32),       # per-head running max
                pltpu.VMEM((heads, tq, 1), jnp.float32),       # per-head running denom
                pltpu.VMEM((heads, tq, d), jnp.float32),       # per-head attn accumulator
                pltpu.VMEM((tq, inner), jnp.bfloat16),         # merged head outputs
            ],
        ),
        compiler_params=pltpu.CompilerParams(
            dimension_semantics=("parallel", "parallel", "arbitrary"),
            vmem_limit_bytes=vmem_limit_bytes),
        cost_estimate=cost,
    )(q, k, v, wo, bo)
    return out


# ----------------------------------------------------------------------------
# pure-JAX reference (mirrors the PyTorch forward) + test
# ----------------------------------------------------------------------------
def _reference(x, params, context=None, *, heads, dim_head):
    B, N, Dq = x.shape
    context = x if context is None else context
    d = dim_head
    q = x @ params["wq"].T
    k = context @ params["wk"].T
    v = context @ params["wv"].T

    def split(t):
        b, s, _ = t.shape
        return t.reshape(b, s, heads, d).transpose(0, 2, 1, 3)      # (B, h, S, d)

    qh, kh, vh = split(q), split(k), split(v)
    sim = jnp.einsum("bhid,bhjd->bhij", qh, kh) * (float(d) ** -0.5)
    attn = jax.nn.softmax(sim, axis=-1)
    out = jnp.einsum("bhij,bhjd->bhid", attn, vh)
    out = out.transpose(0, 2, 1, 3).reshape(B, N, heads * d)
    return out @ params["wo"].T + params["bo"]                       # dropout p=0 -> identity


def _make_params(key, query_dim, context_dim, heads, dim_head):
    inner = heads * dim_head
    ks = jax.random.split(key, 5)
    return {
        "wq": jax.random.normal(ks[0], (inner, query_dim), jnp.float32) / jnp.sqrt(float(query_dim)),
        "wk": jax.random.normal(ks[1], (inner, context_dim), jnp.float32) / jnp.sqrt(float(context_dim)),
        "wv": jax.random.normal(ks[2], (inner, context_dim), jnp.float32) / jnp.sqrt(float(context_dim)),
        "wo": jax.random.normal(ks[3], (query_dim, inner), jnp.float32) / jnp.sqrt(float(inner)),
        "bo": 0.1 * jax.random.normal(ks[4], (query_dim,), jnp.float32),
    }


if __name__ == "__main__":
    key = jax.random.PRNGKey(0)
    k_x, k_ctx, k_p1, k_p2 = jax.random.split(key, 4)

    # cross-attention config: B=2, N=16 queries, M=8 context tokens, 4 heads x 16 dims
    B, N, M = 2, 16, 8
    query_dim, context_dim = 32, 24
    heads, dim_head = 4, 16

    x = jax.random.normal(k_x, (B, N, query_dim), jnp.float32)
    ctx = jax.random.normal(k_ctx, (B, M, context_dim), jnp.float32)

    # --- cross attention (explicit context) ---
    params_x = _make_params(k_p1, query_dim, context_dim, heads, dim_head)
    packed_x = pack_params(params_x, heads=heads, dim_head=dim_head)   # one-time pre-pack
    out_x = jax.block_until_ready(
        cross_attention(x, packed_x, context=ctx, heads=heads, dim_head=dim_head))
    ref_x = _reference(x, params_x, context=ctx, heads=heads, dim_head=dim_head)
    assert out_x.shape == (B, N, query_dim) and out_x.dtype == x.dtype
    err_x = float(jnp.max(jnp.abs(out_x - ref_x)))
    assert err_x < 5e-2, err_x   # bf16 MXU operands -> loosened tolerance

    # --- self attention (context=None path) ---
    params_s = _make_params(k_p2, query_dim, query_dim, heads, dim_head)
    packed_s = pack_params(params_s, heads=heads, dim_head=dim_head)
    out_s = jax.block_until_ready(
        cross_attention(x, packed_s, context=None, heads=heads, dim_head=dim_head))
    ref_s = _reference(x, params_s, context=None, heads=heads, dim_head=dim_head)
    err_s = float(jnp.max(jnp.abs(out_s - ref_s)))
    assert err_s < 5e-2, err_s

    print("KERNEL_OK")
</pallas_src>

<mosaic_0001>
module attributes {stable_mosaic.version = 11 : i64} {
  func.func @_proj_kernel(%arg0: i32, %arg1: i32, %arg2: memref<1x16x32xbf16, #tpu.memory_space<vmem>>, %arg3: memref<32x64xbf16, #tpu.memory_space<vmem>>, %arg4: memref<1x16x64xbf16, #tpu.memory_space<vmem>>) attributes {dimension_semantics = [#tpu.dimension_semantics<parallel>, #tpu.dimension_semantics<parallel>], iteration_bounds = array<i64: 2, 1>, scalar_prefetch = 0 : i64, scratch_operands = 0 : i64, tpu.core_type = #tpu.core_type<tc>, window_params = [{transform_indices = @transform_0, window_bounds = array<i64: 1, 16, 32>}, {pipeline_mode = #tpu.pipeline_mode<synchronous>, transform_indices = @transform_1, window_bounds = array<i64: 32, 64>}, {transform_indices = @transform_2, window_bounds = array<i64: 1, 16, 64>}]} {
    %c0 = arith.constant 0 : index
    %c0_0 = arith.constant 0 : index
    %c0_1 = arith.constant 0 : index
    %0 = vector.load %arg2[%c0, %c0_0, %c0_1] : memref<1x16x32xbf16, #tpu.memory_space<vmem>>, vector<1x16x32xbf16>
    %1 = vector.shape_cast %0 : vector<1x16x32xbf16> to vector<16x32xbf16>
    %c0_2 = arith.constant 0 : index
    %c0_3 = arith.constant 0 : index
    %2 = vector.load %arg3[%c0_2, %c0_3] : memref<32x64xbf16, #tpu.memory_space<vmem>>, vector<32x64xbf16>
    %cst = arith.constant dense<0.000000e+00> : vector<16x64xf32>
    %3 = tpu.matmul %1, %2, %cst {dimension_numbers = #tpu.dot_dimension_numbers<[1], [0], [0], [1], [0, 0, 1, 1], [], []>} : vector<16x32xbf16>, vector<32x64xbf16>, vector<16x64xf32> -> vector<16x64xf32>
    %4 = arith.truncf %3 : vector<16x64xf32> to vector<16x64xbf16>
    %c0_4 = arith.constant 0 : index
    %c0_5 = arith.constant 0 : index
    %c0_6 = arith.constant 0 : index
    %5 = vector.load %arg4[%c0_4, %c0_5, %c0_6] : memref<1x16x64xbf16, #tpu.memory_space<vmem>>, vector<1x16x64xbf16>
    %6 = vector.shape_cast %5 : vector<1x16x64xbf16> to vector<16x64xbf16>
    %7 = vector.shape_cast %4 : vector<16x64xbf16> to vector<1x16x64xbf16>
    tpu.vector_store %arg4[%c0_4, %c0_5, %c0_6], %7 {strides = array<i32>} : memref<1x16x64xbf16, #tpu.memory_space<vmem>>, vector<1x16x64xbf16>,
    return
  }
  func.func @transform_0(%arg0: i32, %arg1: i32) -> (i32, i32, i32) {
    %c0_i32 = arith.constant 0 : i32
    %c0_i32_0 = arith.constant 0 : i32
    return %arg0, %arg1, %c0_i32 : i32, i32, i32
  }
  func.func @transform_1(%arg0: i32, %arg1: i32) -> (i32, i32) {
    %c0_i32 = arith.constant 0 : i32
    %c0_i32_0 = arith.constant 0 : i32
    %c0_i32_1 = arith.constant 0 : i32
    return %c0_i32, %c0_i32_0 : i32, i32
  }
  func.func @transform_2(%arg0: i32, %arg1: i32) -> (i32, i32, i32) {
    %c0_i32 = arith.constant 0 : i32
    %c0_i32_0 = arith.constant 0 : i32
    return %arg0, %arg1, %c0_i32 : i32, i32, i32
  }
}

</mosaic_0001>

<bundles_post_ra>
// kernel: tpu_custom_call.1
= control target key start
LH: loop header
LB: loop body
LE: loop exit
PB: predicated region body
PF: predicated region fallthrough
CT: control target
= control target key end

     0   :  { %7 = vsyncpa [#allocation3], 0  ;;  %s798_s0 = inlined_call_operand.hbm [shape: bf16[2,16,32], index: 0, kind: input, shape index: {}]   ;;  %s799_s1 = inlined_call_operand.hbm [shape: bf16[32,64], index: 1, kind: input, shape index: {}]   ;;  %s800_s2 = inlined_call_operand.hbm [shape: bf16[2,16,64], index: 2, kind: output, shape index: {}]  }
   0x1   :  { %9 = vsyncpa [#allocation3 + $0x1], 0 }
   0x2   :  { %10 = vsyncpa [#allocation6], 0 }
   0x3   :  { %11 = vsyncpa [#allocation4], 0 }
   0x4   :  { %13 = vsyncpa [#allocation4 + $0x1], 0  ;;  %s643_s9 = smov 0   ;;  %s645_s10 = smov 0  }
   0x5   :  { %s647_s11 = smov 0   ;;  %s649_s12 = smov 0  }
   0x6   :  { %s651_s13 = smov 0   ;;  %s653_s14 = smov 0  }
   0x7 LB: > { %s363_s15 = sadd.s32 4294967295, %s621_s14   ;;  %s364_s16 = sadd.s32 4294967294, %s621_s14   ;;  %s621_s14 = sphi %s653_s14, %s19_s14   ;;  %s617_s13 = sphi %s651_s13, %s812_s13   ;;  %s613_s12 = sphi %s649_s12, %s811_s12   ;;  %s609_s11 = sphi %s647_s11, %s810_s11   ;;  %s605_s10 = sphi %s645_s10, %s809_s10   ;;  %s601_s9 = sphi %s643_s9, %s808_s9  }
   0x8   : > { %p53_p0 = scmp.ne.s32.totalorder %s605_s10, %s601_s9  ;;  %p677_p1 = scmp.eq.s32.totalorder %s363_s15, 0 }
   0x9   : > { %p681_p2 = scmp.eq.s32.totalorder %s363_s15, 1  ;;  %p106_p3 = scmp.eq.s32.totalorder %s364_s16, 1 }
   0xa   : > { %p687_p4 = por %p677_p1, %p53_p0  ;;  %p365_p5 = scmp.ge.s32.totalorder %s621_s14, 1 }
   0xb   : > { %p692_p6 = por %p106_p3, %p53_p0  ;;  %p113_p7 = scmp.lt.s32.totalorder %s621_s14, 3 }
   0xc   : > { %s124_s23 = sshll.u32 %s799_s1, 4  ;;  %s623_s25 = smov [#allocation5]   ;;  %s125_s23 = int_to_ptr.hbm [resolvable:$true] %s124_s23 }
   0xd   : > { %p700_p8 = pnand %p365_p5, %p113_p7  ;;  %s126_s26 = sshll.u32 %s623_s25, 4  ;;  %s127_s26 = int_to_ptr.vmem [resolvable:$true] %s126_s26 }
   0xe   : > { %p367_p11 = scmp.ge.s32.totalorder %s621_s14, 2  ;;  %s624_s27 = smov 64  }
   0xf   : > { %p406_p9 = pneg %p700_p8  ;;  %s625_s28 = smov 4  }
  0x10   : > { %s31_s29 = sadd.s32 1, %s617_s13  ;;  %s40_s30 = sadd.s32 1, %s609_s11 }
  0x11   : > { %p407_p10 = pnand %p406_p9, %p677_p1  ;;  %p33_p12 = scmp.ge.s32.totalorder %s31_s29, 2 }
  0x12   : > { %p47_p13 = scmp.ne.s32.totalorder %s609_s11, %s605_s10  ;;  %p48_p0 = scmp.eq.s32.totalorder %s621_s14, 0 }
  0x13   : > { %409 = dma.hbm_to_vmem [thread:$0]  (!%p407_p10), %s125_s23, 256, %s127_s26, [#allocation6], %s624_s27, %s624_s27, %s625_s28  }
  0x14   : > { %s814_s29 = smov (%p33_p12, %s31_s29), 0  ;;  %p719_p3 = por %p48_p0, %p47_p13 }
  0x15   : > { %p725_p5 = por %p681_p2, %p47_p13  ;;  %s35_s5 = ssub.s32 %s617_s13, %s814_s29 }
  0x16   : > { %p419_p7 = scmp.lt.s32.totalorder %s621_s14, 2  ;;  %p38_p9 = scmp.eq.s32.totalorder %s35_s5, 0 }
  0x17   : > { %s140_s6 = sand.u32 1, %s609_s11   ;;  %s393_s15 = sshll.u32 %s617_s13, 3 }
  0x18   : > { %s368_s7 = sshll.u32 %s140_s6, 3  ;;  %s151_s22 = scalar_lea.hbm %s798_s0, %s393_s15 }
  0x19   : > { %s734_s8 = scalar_select %p38_p9, %s609_s11, %s40_s30  }
  0x1a   : > { %s144_s23 = scalar_lea.vmem [#allocation2], %s368_s7  ;;  %s152_s18 = sshll.u32 %s151_s22, 4  ;;  %s153_s18 = int_to_ptr.hbm [resolvable:$true] %s152_s18 }
  0x1b   : > { %s154_s25 = sshll.u32 %s144_s23, 4  ;;  %p411_p2 = pnand %p419_p7, %p719_p3  ;;  %s155_s25 = int_to_ptr.vmem [resolvable:$true] %s154_s25 }
  0x1c   : > { %s141_s26 = scalar_lea.sflag [#allocation3], %s140_s6  ;;  %166 = sbr.rel (%p700_p8) target bundleno = 184 (0xb8), region = 28 }
  0x1d   : > { %413 = dma.hbm_to_vmem [thread:$0]  (!%p411_p2), %s153_s18, 128, %s155_s25, %s141_s26, %s624_s27, %s624_s27, %s625_s28  }
  0x1e   : > { %s748_s30 = sand.u32 (!%p700_p8), 1, %s605_s10  }
  0x1f   : > { %s372_s5 = sshll.u32 (!%p700_p8), %s748_s30, 3  ;;  %s169_s7 = scalar_lea.sflag (!%p700_p8), [#allocation3], %s748_s30 }
  0x20   : > { %s172_s15 = scalar_lea.vmem (!%p700_p8), [#allocation2], %s372_s5 }
  0x21   : > { %588 = dma.done.wait (%p687_p4), %s169_s7, 128  }
  0x22   : > { %590 = vsyncadd (%p687_p4), %s169_s7, 4294967168 }
  0x23   : > { %592 = dma.done.wait (%p677_p1), [#allocation6], 256  }
  0x24   : > { %594 = vsyncadd (%p677_p1), [#allocation6], 4294967040  ;;  %v396_v0 = vld [vmem:[#allocation5 + $0x8] sm:$0xff]  ;;  %v395_v1 = vld [vmem:[#allocation5] sm:$0xff]  ;;  %vm225_vm0 = vcmask 261120   ;;  %s397_s24 = sshll.u32 %s613_s12, 3 }
  0x25   : > { %235 = vmatpush.bf16.msra.mxu0 %v396_v0  ;;  %v394_v2 = vld [vmem:[%s172_s15] sm:$0xff]  ;;  %vm245_vm1 = vcmask 519168   ;;  %s262_s28 = scalar_lea.hbm %s800_s2, %s397_s24  ;;  %s198_s17 = scalar_lea.vmem [#allocation7], %s372_s5 }
  0x26   : > { %s263_s3 = sshll.u32 %s198_s17, 4  ;;  %s265_s6 = sshll.u32 %s262_s28, 4  ;;  %s264_s3 = int_to_ptr.vmem [resolvable:$true] %s263_s3  ;;  %s266_s6 = int_to_ptr.hbm [resolvable:$true] %s265_s6 }
  0x27   : > { %s249_s16 = scalar_lea.sflag [#allocation4], %s748_s30  ;;  %s549_s21 = sshra.s32 %s266_s6, 4  ;;  %s550_s21 = int_to_ptr.hbm [resolvable:$true] %s549_s21 }
  0x28   : > { %s551_s12 = scalar_lea.hbm %s550_s21, 8  ;;  %s555_s25 = scalar_lea.hbm %s800_s2, 16 }
  0x29   : > { %236 = vmatpush.bf16.msra.mxu0 %v395_v1  ;;  %p552_p1 = scmp.ne.s32.totalorder %s550_s21, %s551_s12  ;;  %p556_p10 = scmp.lt.s32.totalorder %s550_s21, %s800_s2 }
  0x2a   : > { %p557_p12 = scmp.lt.s32.totalorder %s555_s25, %s551_s12 }
  0x2b   : > { %p553_p4 = pnand %p552_p1, %p725_p5 }
  0x2c   : > { %387 = vmatmul.msk.bf16.vlgmr.msra.gmra.mxu0 %vm225_vm0, %v394_v2  ;;  %p558_p13 = por %p557_p12, %p556_p10 }
  0x2d   : > { %p554_p8 = pneg %p553_p4 }
  0x2f   : > { %p559_p0 = pnand %p558_p13, %p554_p8 }
  0xa9   : > { %v238_v3 = vpop.f32.mrf.mxu0 }
  0xaa   : > { %v243_v4 = vpack.c.bf16 %v238_v3, %v238_v3 }
  0xac   : > { %246 = vst.msk [vmem:[%s198_s17] sm:$0xf] %vm245_vm1, %v243_v4 }
  0xb1   : > { %v240_v5 = vpop.f32.mrf.mxu0 }
  0xb2   : > { %v244_v6 = vpack.c.bf16 %v240_v5, %v240_v5 }
  0xb4   : > { %247 = vst.msk [vmem:[%s198_s17 + $0x4] sm:$0xf] %vm245_vm1, %v244_v6 }
  0xb5   : > { %562 = shalt.err (!%p559_p0)
}
  0xb6   : > { %s626_s30 = smov 64   ;;  %s627_s5 = smov 4  }
  0xb7   : > { %404 = dma.vmem_to_hbm [thread:$0]  (%p725_p5), %s264_s3, 128, %s266_s6, %s249_s16, %s626_s30, %s626_s30, %s627_s5  }
  0xb8 PF: > { %s280_s7 = sand.u32 1, %s601_s9   ;;  %p415_p3 = pnand %p367_p11, %p692_p6 }
  0xb9   : > { %s281_s15 = scalar_lea.sflag [#allocation4], %s280_s7 }
  0xba   : > { %p416_p7 = pneg %p415_p3 }
  0xbc   : > { %596 = dma.done.wait (%p416_p7), %s281_s15, 128  }
  0xbd   : > { %598 = vsyncadd (%p416_p7), %s281_s15, 4294967168  ;;  %s19_s14 = sadd.s32 1, %s621_s14   ;;  %s808_s9 = smov %s605_s10 }
  0xbe   : > { %p16_p9 = scmp.ge.s32.totalorder %s19_s14, 4   ;;  %s809_s10 = smov %s609_s11 }
  0xbf   : > { %s810_s11 = smov %s734_s8  ;;  %s811_s12 = smov %s617_s13 }
  0xc0   : > { %s812_s13 = smov %s814_s29  ;;  %18 = sbr.rel (!%p16_p9) target bundleno = 7 (0x7), region = 77 }
  0xc5   :  { %287 = vsyncpa [#allocation3], 1 }
  0xc6   :  { %289 = vsyncpa [#allocation3 + $0x1], 1 }
  0xc7   :  { %290 = vsyncpa [#allocation6], 1 }
  0xc8   :  { %291 = vsyncpa [#allocation4], 1 }
  0xc9   :  { %293 = vsyncpa [#allocation4 + $0x1], 1 }

</bundles_post_ra>
